<compile_context>
chip_gen: v7x
topology: tpu7x:2x2x1
jax: 0.10.0
libtpu: 0.0.40
codegen_flags: <defaults>
</compile_context>

<pallas_src>
import functools
import math

import jax
import jax.numpy as jnp
from jax.experimental import pallas as pl
from jax.experimental.pallas import tpu as pltpu


# ----------------------------------------------------------------------------
# Fused kernel: one batch element b per grid step.
#   x_ref    : [1, N, P*d_in]            x for batch b, time folded into lanes
#   sup_ref  : [S, N, N]                 static supports (resident)
#   adpt_ref : [1, N, N]                 adaptive adjacency for batch b ('pam')
#   w_ref    : [M*P*d_in, P*d_out]       weight expanded block-diagonally over P
#                                        (identity/residual already folded into block 0)
#   b_ref    : [1, P*d_out]              bias tiled over P (f32)
#   o_ref    : [1, N, P*d_out]           lane-dense output slab for batch b
#   feat_ref : [N, M*P*d_in]  (scratch)  staged diffusion features (bf16)
# ----------------------------------------------------------------------------
def _spatial_graph_conv_kernel(x_ref, sup_ref, adpt_ref, w_ref, b_ref, o_ref, feat_ref,
                               *, S, K, PD):
    x0 = x_ref[0]                                             # [N, P*d_in] bf16

    # m = 0: identity diffusion term (residual zero-pad folded into w block 0 on host).
    feat_ref[:, 0:PD] = x0

    # m = 1 .. S*K: K-step random-walk chains, one per support; each step is one wide
    # [N, N] @ [N, P*d_in] MXU dot (f32 accumulation, bf16 staging).
    m = 1
    for s in range(S):
        xk = x0
        for _ in range(K):
            xk = jnp.dot(sup_ref[s], xk,
                         preferred_element_type=jnp.float32).astype(jnp.bfloat16)
            feat_ref[:, m * PD:(m + 1) * PD] = xk
            m += 1

    # m = M-1: adaptive ('pam') term, per-batch adjacency (torch.bmm column slice).
    x_add = jnp.dot(adpt_ref[0], x0,
                    preferred_element_type=jnp.float32).astype(jnp.bfloat16)
    feat_ref[:, m * PD:(m + 1) * PD] = x_add

    # Single wide-contraction MXU dot over all M feature blocks at once:
    #   [N, M*P*d_in] @ [M*P*d_in, P*d_out] -> [N, P*d_out]  (f32 accumulate)
    acc = jnp.dot(feat_ref[...], w_ref[...], preferred_element_type=jnp.float32)

    # f32 epilogue: bias + ReLU, lane-dense (384-lane) unmasked store.
    o_ref[0] = jnp.maximum(acc + b_ref[...], 0.0).astype(o_ref.dtype)


# ----------------------------------------------------------------------------
# Wrapper: mirrors SpatialConvLayer.forward
#   x        : [B, P, N, d_in]   (P == his_len == 12 in the module)
#   supports : [S, N, N]
#   adpt_adj : [B, N, N]
#   weight   : [M*d_in, d_out]   with M = S*max_diffusion_step + 2  (adpt_type='pam')
#   biases   : [d_out]
# returns [B, P, N, d_out]  (f32)
# ----------------------------------------------------------------------------
def spatial_conv_layer_forward(x, supports, adpt_adj, weight, biases, *, max_diffusion_step):
    B, P, N, d_in = x.shape
    S = supports.shape[0]
    K = max_diffusion_step
    d_out = weight.shape[1]
    M = S * K + 2
    assert weight.shape[0] == M * d_in, (weight.shape, M, d_in)

    if d_in > d_out:
        # TODO(synk): d_in > d_out residual branch uses a learned 1x1 input_conv; not implemented.
        raise NotImplementedError("d_in > d_out residual (input_conv) not implemented")

    f32, bf16 = jnp.float32, jnp.bfloat16
    PD_in, PD_out = P * d_in, P * d_out

    # Fold the residual into the identity-term weight block (exact, done in f32 BEFORE the
    # bf16 cast):  relu(graph_conv(x) + zero_pad(x)) == relu(... + x0 @ (W_0 + eye) ...)
    w3 = weight.astype(f32).reshape(M, d_in, d_out)
    w3 = w3.at[0].add(jnp.eye(d_in, d_out, dtype=f32))

    # Expand the weight block-diagonally over the time axis so the kernel can consume the
    # [N, M*P*d_in] feature slab with a SINGLE dot and emit a lane-dense [N, P*d_out] slab:
    #   w_exp[m*P*d_in + p*d_in + d, p*d_out + e] = w3[m, d, e]
    eye_p = jnp.eye(P, dtype=f32)
    w_exp = jnp.einsum("pq,mde->mpdqe", eye_p, w3).reshape(M * PD_in, PD_out).astype(bf16)

    # Bias tiled over P so it broadcasts over the lane-dense output slab (kept f32).
    b_slab = jnp.tile(biases.astype(f32), P).reshape(1, PD_out)

    # Lane-dense input layout: x_slab[b, n, p*d_in + d] = x[b, p, n, d]
    x_slab = jnp.transpose(x, (0, 2, 1, 3)).reshape(B, N, PD_in).astype(bf16)
    sup_b = supports.astype(bf16)
    adpt_b = adpt_adj.astype(bf16)

    kernel = functools.partial(_spatial_graph_conv_kernel, S=S, K=K, PD=PD_in)
    out_slab = pl.pallas_call(
        kernel,
        grid=(B,),   # >=2 parallel steps in the demo -> both v7x TensorCores get work.
        in_specs=[
            pl.BlockSpec((1, N, PD_in), lambda b: (b, 0, 0)),          # x[b] slab
            pl.BlockSpec((S, N, N), lambda b: (0, 0, 0)),              # supports (resident)
            pl.BlockSpec((1, N, N), lambda b: (b, 0, 0)),              # adpt_adj[b]
            pl.BlockSpec((M * PD_in, PD_out), lambda b: (0, 0)),       # expanded weight (resident)
            pl.BlockSpec((1, PD_out), lambda b: (0, 0)),               # bias slab (resident)
        ],
        out_specs=pl.BlockSpec((1, N, PD_out), lambda b: (b, 0, 0)),
        out_shape=jax.ShapeDtypeStruct((B, N, PD_out), f32),
        scratch_shapes=[pltpu.VMEM((N, M * PD_in), bf16)],             # staged features
        compiler_params=pltpu.CompilerParams(
            dimension_semantics=("parallel",),
            vmem_limit_bytes=32 * 1024 * 1024,
        ),
    )(x_slab, sup_b, adpt_b, w_exp, b_slab)

    # Layout plumbing only: [B, N, P*d_out] -> [B, P, N, d_out]
    return jnp.transpose(out_slab.reshape(B, N, P, d_out), (0, 2, 1, 3))


# ----------------------------------------------------------------------------
# Pure-JAX reference mirroring the PyTorch forward op-by-op (for correctness).
# ----------------------------------------------------------------------------
def reference_forward(x, supports, adpt_adj, weight, biases, *, K):
    B, P, N, d_in = x.shape
    S = supports.shape[0]
    d_out = weight.shape[1]
    M = S * K + 2

    # SpatialConvLayer.forward
    xt = jnp.transpose(x, (0, 3, 1, 2))                                  # [B, d_in, P, N]
    if d_in < d_out:
        x_input = jnp.concatenate(
            [xt, jnp.zeros((B, d_out - d_in, P, N), x.dtype)], axis=1)
    elif d_in == d_out:
        x_input = xt
    else:
        raise NotImplementedError
    xg = jnp.transpose(xt, (0, 2, 1, 3))                                 # [B, P, d_in, N]
    x_flat = xg.reshape(-1, N)                                           # [B*P*d_in, N]

    # EncGraphConv.forward (adpt_type='pam')
    x_add = x_flat.reshape(B, P, d_in, N).transpose(0, 3, 1, 2).reshape(B, N, -1)
    x_add = jnp.matmul(adpt_adj, x_add).reshape(B, N, P, d_in)
    x_add = jnp.transpose(x_add, (1, 0, 2, 3)).reshape(N, B * P * d_in)

    x0 = x_flat.T                                                        # [N, B*P*d_in]
    feats = [x0]
    if K > 0:
        for s in range(S):
            x1 = supports[s] @ x0
            feats.append(x1)
            for _ in range(2, K + 1):
                x1 = supports[s] @ x1
                feats.append(x1)
    feats.append(x_add)

    xc = jnp.stack(feats, axis=0).reshape(M, N, B * P, d_in)
    xc = jnp.transpose(xc, (2, 1, 0, 3)).reshape(B * P * N, M * d_in)
    xc = xc @ weight + biases
    x_conv = xc.reshape(B, P, N, d_out)
    return jax.nn.relu(x_conv + jnp.transpose(x_input, (0, 2, 3, 1)))


if __name__ == "__main__":
    # Small config consistent with the module: his_len is fixed to 12 -> seq_len P = 12.
    B, P, N = 2, 12, 16
    d_in, d_out = 4, 32
    K = 2                              # max_diffusion_step
    S = 2                              # filter_type='dual_random_walk' -> 2 supports
    M = S * K + 2                      # num_matrices (adpt_type='pam')

    key = jax.random.PRNGKey(0)
    kx, ks, ka, kw, kb = jax.random.split(key, 5)

    x = jax.random.normal(kx, (B, P, N, d_in), jnp.float32)
    supports = jax.random.uniform(ks, (S, N, N), jnp.float32) + 0.1
    supports = supports / supports.sum(axis=-1, keepdims=True)           # random-walk-like
    adpt_adj = jax.nn.softmax(jax.random.normal(ka, (B, N, N), jnp.float32), axis=-1)

    # Parameter init shaped like the module (xavier_normal_, gain=1.414). The module's
    # bias_start is 0.0; a small random bias is used here so the bias path is exercised.
    std = 1.414 * math.sqrt(2.0 / (M * d_in + d_out))
    weight = std * jax.random.normal(kw, (M * d_in, d_out), jnp.float32)
    biases = 0.1 * jax.random.normal(kb, (d_out,), jnp.float32)

    out = spatial_conv_layer_forward(x, supports, adpt_adj, weight, biases,
                                     max_diffusion_step=K)
    out = jax.block_until_ready(out)

    ref = reference_forward(x, supports, adpt_adj, weight, biases, K=K)
    ref = jax.block_until_ready(ref)

    assert out.shape == (B, P, N, d_out), out.shape
    # bf16 MXU inputs with f32 accumulation: use a relative-ish tolerance vs f32 reference.
    err = float(jnp.max(jnp.abs(out - ref) / (1.0 + jnp.abs(ref))))
    assert err < 5e-2, f"mismatch vs reference: normalized max_err={err}"

    print("KERNEL_OK")
</pallas_src>

<mosaic_0001>
module attributes {stable_mosaic.version = 11 : i64} {
  func.func @_spatial_graph_conv_kernel(%arg0: i32, %arg1: memref<1x16x48xbf16, #tpu.memory_space<vmem>>, %arg2: memref<2x16x16xbf16, #tpu.memory_space<vmem>>, %arg3: memref<1x16x16xbf16, #tpu.memory_space<vmem>>, %arg4: memref<288x384xbf16, #tpu.memory_space<vmem>>, %arg5: memref<1x384xf32, #tpu.memory_space<vmem>>, %arg6: memref<1x16x384xf32, #tpu.memory_space<vmem>>, %arg7: memref<16x288xbf16, #tpu.memory_space<vmem>>) attributes {dimension_semantics = [#tpu.dimension_semantics<parallel>], iteration_bounds = array<i64: 2>, scalar_prefetch = 0 : i64, scratch_operands = 1 : i64, tpu.core_type = #tpu.core_type<tc>, window_params = [{transform_indices = @transform_0, window_bounds = array<i64: 1, 16, 48>}, {pipeline_mode = #tpu.pipeline_mode<synchronous>, transform_indices = @transform_1, window_bounds = array<i64: 2, 16, 16>}, {transform_indices = @transform_2, window_bounds = array<i64: 1, 16, 16>}, {pipeline_mode = #tpu.pipeline_mode<synchronous>, transform_indices = @transform_3, window_bounds = array<i64: 288, 384>}, {pipeline_mode = #tpu.pipeline_mode<synchronous>, transform_indices = @transform_4, window_bounds = array<i64: 1, 384>}, {transform_indices = @transform_5, window_bounds = array<i64: 1, 16, 384>}]} {
    %c0 = arith.constant 0 : index
    %c0_0 = arith.constant 0 : index
    %c0_1 = arith.constant 0 : index
    %0 = vector.load %arg1[%c0, %c0_0, %c0_1] : memref<1x16x48xbf16, #tpu.memory_space<vmem>>, vector<1x16x48xbf16>
    %1 = vector.shape_cast %0 : vector<1x16x48xbf16> to vector<16x48xbf16>
    %c0_2 = arith.constant 0 : index
    %c0_3 = arith.constant 0 : index
    %2 = vector.load %arg7[%c0_2, %c0_3] : memref<16x288xbf16, #tpu.memory_space<vmem>>, vector<16x48xbf16>
    tpu.vector_store %arg7[%c0_2, %c0_3], %1 {strides = array<i32>} : memref<16x288xbf16, #tpu.memory_space<vmem>>, vector<16x48xbf16>,
    %c0_4 = arith.constant 0 : index
    %c0_5 = arith.constant 0 : index
    %c0_6 = arith.constant 0 : index
    %3 = vector.load %arg2[%c0_4, %c0_5, %c0_6] : memref<2x16x16xbf16, #tpu.memory_space<vmem>>, vector<1x16x16xbf16>
    %4 = vector.shape_cast %3 : vector<1x16x16xbf16> to vector<16x16xbf16>
    %cst = arith.constant dense<0.000000e+00> : vector<16x48xf32>
    %5 = tpu.matmul %4, %1, %cst {dimension_numbers = #tpu.dot_dimension_numbers<[1], [0], [0], [1], [0, 0, 1, 1], [], []>} : vector<16x16xbf16>, vector<16x48xbf16>, vector<16x48xf32> -> vector<16x48xf32>
    %6 = arith.truncf %5 : vector<16x48xf32> to vector<16x48xbf16>
    %c0_7 = arith.constant 0 : index
    %c48 = arith.constant 48 : index
    %7 = vector.load %arg7[%c0_7, %c48] : memref<16x288xbf16, #tpu.memory_space<vmem>>, vector<16x48xbf16>
    tpu.vector_store %arg7[%c0_7, %c48], %6 {strides = array<i32>} : memref<16x288xbf16, #tpu.memory_space<vmem>>, vector<16x48xbf16>,
    %c0_8 = arith.constant 0 : index
    %c0_9 = arith.constant 0 : index
    %c0_10 = arith.constant 0 : index
    %8 = vector.load %arg2[%c0_8, %c0_9, %c0_10] : memref<2x16x16xbf16, #tpu.memory_space<vmem>>, vector<1x16x16xbf16>
    %9 = vector.shape_cast %8 : vector<1x16x16xbf16> to vector<16x16xbf16>
    %cst_11 = arith.constant dense<0.000000e+00> : vector<16x48xf32>
    %10 = tpu.matmul %9, %6, %cst_11 {dimension_numbers = #tpu.dot_dimension_numbers<[1], [0], [0], [1], [0, 0, 1, 1], [], []>} : vector<16x16xbf16>, vector<16x48xbf16>, vector<16x48xf32> -> vector<16x48xf32>
    %11 = arith.truncf %10 : vector<16x48xf32> to vector<16x48xbf16>
    %c0_12 = arith.constant 0 : index
    %c96 = arith.constant 96 : index
    %12 = vector.load %arg7[%c0_12, %c96] : memref<16x288xbf16, #tpu.memory_space<vmem>>, vector<16x48xbf16>
    tpu.vector_store %arg7[%c0_12, %c96], %11 {strides = array<i32>} : memref<16x288xbf16, #tpu.memory_space<vmem>>, vector<16x48xbf16>,
    %c1 = arith.constant 1 : index
    %c0_13 = arith.constant 0 : index
    %c0_14 = arith.constant 0 : index
    %13 = vector.load %arg2[%c1, %c0_13, %c0_14] : memref<2x16x16xbf16, #tpu.memory_space<vmem>>, vector<1x16x16xbf16>
    %14 = vector.shape_cast %13 : vector<1x16x16xbf16> to vector<16x16xbf16>
    %cst_15 = arith.constant dense<0.000000e+00> : vector<16x48xf32>
    %15 = tpu.matmul %14, %1, %cst_15 {dimension_numbers = #tpu.dot_dimension_numbers<[1], [0], [0], [1], [0, 0, 1, 1], [], []>} : vector<16x16xbf16>, vector<16x48xbf16>, vector<16x48xf32> -> vector<16x48xf32>
    %16 = arith.truncf %15 : vector<16x48xf32> to vector<16x48xbf16>
    %c0_16 = arith.constant 0 : index
    %c144 = arith.constant 144 : index
    %17 = vector.load %arg7[%c0_16, %c144] : memref<16x288xbf16, #tpu.memory_space<vmem>>, vector<16x48xbf16>
    tpu.vector_store %arg7[%c0_16, %c144], %16 {strides = array<i32>} : memref<16x288xbf16, #tpu.memory_space<vmem>>, vector<16x48xbf16>,
    %c1_17 = arith.constant 1 : index
    %c0_18 = arith.constant 0 : index
    %c0_19 = arith.constant 0 : index
    %18 = vector.load %arg2[%c1_17, %c0_18, %c0_19] : memref<2x16x16xbf16, #tpu.memory_space<vmem>>, vector<1x16x16xbf16>
    %19 = vector.shape_cast %18 : vector<1x16x16xbf16> to vector<16x16xbf16>
    %cst_20 = arith.constant dense<0.000000e+00> : vector<16x48xf32>
    %20 = tpu.matmul %19, %16, %cst_20 {dimension_numbers = #tpu.dot_dimension_numbers<[1], [0], [0], [1], [0, 0, 1, 1], [], []>} : vector<16x16xbf16>, vector<16x48xbf16>, vector<16x48xf32> -> vector<16x48xf32>
    %21 = arith.truncf %20 : vector<16x48xf32> to vector<16x48xbf16>
    %c0_21 = arith.constant 0 : index
    %c192 = arith.constant 192 : index
    %22 = vector.load %arg7[%c0_21, %c192] : memref<16x288xbf16, #tpu.memory_space<vmem>>, vector<16x48xbf16>
    tpu.vector_store %arg7[%c0_21, %c192], %21 {strides = array<i32>} : memref<16x288xbf16, #tpu.memory_space<vmem>>, vector<16x48xbf16>,
    %c0_22 = arith.constant 0 : index
    %c0_23 = arith.constant 0 : index
    %c0_24 = arith.constant 0 : index
    %23 = vector.load %arg3[%c0_22, %c0_23, %c0_24] : memref<1x16x16xbf16, #tpu.memory_space<vmem>>, vector<1x16x16xbf16>
    %24 = vector.shape_cast %23 : vector<1x16x16xbf16> to vector<16x16xbf16>
    %cst_25 = arith.constant dense<0.000000e+00> : vector<16x48xf32>
    %25 = tpu.matmul %24, %1, %cst_25 {dimension_numbers = #tpu.dot_dimension_numbers<[1], [0], [0], [1], [0, 0, 1, 1], [], []>} : vector<16x16xbf16>, vector<16x48xbf16>, vector<16x48xf32> -> vector<16x48xf32>
    %26 = arith.truncf %25 : vector<16x48xf32> to vector<16x48xbf16>
    %c0_26 = arith.constant 0 : index
    %c240 = arith.constant 240 : index
    %27 = vector.load %arg7[%c0_26, %c240] : memref<16x288xbf16, #tpu.memory_space<vmem>>, vector<16x48xbf16>
    tpu.vector_store %arg7[%c0_26, %c240], %26 {strides = array<i32>} : memref<16x288xbf16, #tpu.memory_space<vmem>>, vector<16x48xbf16>,
    %c0_27 = arith.constant 0 : index
    %c0_28 = arith.constant 0 : index
    %28 = vector.load %arg7[%c0_27, %c0_28] : memref<16x288xbf16, #tpu.memory_space<vmem>>, vector<16x288xbf16>
    %c0_29 = arith.constant 0 : index
    %c0_30 = arith.constant 0 : index
    %29 = vector.load %arg4[%c0_29, %c0_30] : memref<288x384xbf16, #tpu.memory_space<vmem>>, vector<288x384xbf16>
    %cst_31 = arith.constant dense<0.000000e+00> : vector<16x384xf32>
    %30 = tpu.matmul %28, %29, %cst_31 {dimension_numbers = #tpu.dot_dimension_numbers<[1], [0], [0], [1], [0, 0, 1, 1], [], []>} : vector<16x288xbf16>, vector<288x384xbf16>, vector<16x384xf32> -> vector<16x384xf32>
    %c0_32 = arith.constant 0 : index
    %c0_33 = arith.constant 0 : index
    %31 = vector.load %arg5[%c0_32, %c0_33] : memref<1x384xf32, #tpu.memory_space<vmem>>, vector<1x384xf32>
    %32 = vector.broadcast %31 : vector<1x384xf32> to vector<16x384xf32>
    %33 = arith.addf %30, %32 : vector<16x384xf32>
    %cst_34 = arith.constant 0.000000e+00 : f32
    %34 = vector.broadcast %cst_34 : f32 to vector<16x384xf32>
    %35 = arith.maximumf %33, %34 : vector<16x384xf32>
    %c0_35 = arith.constant 0 : index
    %c0_36 = arith.constant 0 : index
    %c0_37 = arith.constant 0 : index
    %36 = vector.load %arg6[%c0_35, %c0_36, %c0_37] : memref<1x16x384xf32, #tpu.memory_space<vmem>>, vector<1x16x384xf32>
    %37 = vector.shape_cast %36 : vector<1x16x384xf32> to vector<16x384xf32>
    %38 = vector.shape_cast %35 : vector<16x384xf32> to vector<1x16x384xf32>
    tpu.vector_store %arg6[%c0_35, %c0_36, %c0_37], %38 {strides = array<i32>} : memref<1x16x384xf32, #tpu.memory_space<vmem>>, vector<1x16x384xf32>,
    return
  }
  func.func @transform_0(%arg0: i32) -> (i32, i32, i32) {
    %c0_i32 = arith.constant 0 : i32
    %c0_i32_0 = arith.constant 0 : i32
    %c0_i32_1 = arith.constant 0 : i32
    return %arg0, %c0_i32, %c0_i32_0 : i32, i32, i32
  }
  func.func @transform_1(%arg0: i32) -> (i32, i32, i32) {
    %c0_i32 = arith.constant 0 : i32
    %c0_i32_0 = arith.constant 0 : i32
    %c0_i32_1 = arith.constant 0 : i32
    %c0_i32_2 = arith.constant 0 : i32
    return %c0_i32, %c0_i32_0, %c0_i32_1 : i32, i32, i32
  }
  func.func @transform_2(%arg0: i32) -> (i32, i32, i32) {
    %c0_i32 = arith.constant 0 : i32
    %c0_i32_0 = arith.constant 0 : i32
    %c0_i32_1 = arith.constant 0 : i32
    return %arg0, %c0_i32, %c0_i32_0 : i32, i32, i32
  }
  func.func @transform_3(%arg0: i32) -> (i32, i32) {
    %c0_i32 = arith.constant 0 : i32
    %c0_i32_0 = arith.constant 0 : i32
    %c0_i32_1 = arith.constant 0 : i32
    return %c0_i32, %c0_i32_0 : i32, i32
  }
  func.func @transform_4(%arg0: i32) -> (i32, i32) {
    %c0_i32 = arith.constant 0 : i32
    %c0_i32_0 = arith.constant 0 : i32
    %c0_i32_1 = arith.constant 0 : i32
    return %c0_i32, %c0_i32_0 : i32, i32
  }
  func.func @transform_5(%arg0: i32) -> (i32, i32, i32) {
    %c0_i32 = arith.constant 0 : i32
    %c0_i32_0 = arith.constant 0 : i32
    %c0_i32_1 = arith.constant 0 : i32
    return %arg0, %c0_i32, %c0_i32_0 : i32, i32, i32
  }
}

</mosaic_0001>

<bundles_post_ra>
// kernel: tpu_custom_call.1
= control target key start
LH: loop header
LB: loop body
LE: loop exit
PB: predicated region body
PF: predicated region fallthrough
CT: control target
= control target key end

     0   :  { %s2212_s0 = inlined_call_operand.hbm [shape: bf16[2,16,48], index: 0, kind: input, shape index: {}]   ;;  %s2213_s1 = inlined_call_operand.hbm [shape: bf16[2,16,16], index: 1, kind: input, shape index: {}]   ;;  %s2214_s2 = inlined_call_operand.hbm [shape: bf16[2,16,16], index: 2, kind: input, shape index: {}]   ;;  %s2215_s3 = inlined_call_operand.hbm [shape: bf16[288,384], index: 3, kind: input, shape index: {}]   ;;  %s2216_s4 = inlined_call_operand.vmem [shape: f32[1,384], index: 4, kind: input, shape index: {}]   ;;  %s2217_s5 = inlined_call_operand.hbm [shape: f32[2,16,384], index: 5, kind: output, shape index: {}]  }
   0x1   :  { %2231 = sst [smem:[#allocation18_spill]] %s2212_s0 }
   0x2   :  { %2232 = sst [smem:[#allocation19_spill]] %s2213_s1 }
   0x3   :  { %10 = vsyncpa [#allocation4], 0 }
   0x4   :  { %12 = vsyncpa [#allocation4 + $0x1], 0 }
   0x5   :  { %13 = vsyncpa [#allocation7], 0 }
   0x6   :  { %14 = vsyncpa [#allocation5], 0 }
   0x7   :  { %16 = vsyncpa [#allocation5 + $0x1], 0  ;;  %s1884_s18 = smov 0   ;;  %s1886_s19 = smov 0  }
   0x8   :  { %s1888_s20 = smov 0   ;;  %s1890_s21 = smov 0  }
   0x9 LB: > { %2233 = sst [smem:[#allocation16_spill]] %s1829_s20  ;;  %s1905_s22 = sadd.s32 4294967295, %s1833_s21   ;;  %s1833_s21 = sphi %s1890_s21, %s2264_s21   ;;  %s1829_s20 = sphi %s1888_s20, %s2261_s20   ;;  %s1825_s19 = sphi %s1886_s19, %s2263_s19   ;;  %s1821_s18 = sphi %s1884_s18, %s2262_s18  }
   0xa   : > { %s1304_s23 = sadd.s32 4294967294, %s1833_s21   ;;  %p42_p0 = scmp.ne.s32.totalorder %s1825_s19, %s1821_s18 }
   0xb   : > { %p2218_p1 = scmp.eq.s32.totalorder %s1905_s22, 0  ;;  %p161_p3 = scmp.eq.s32.totalorder %s1304_s23, 1 }
   0xc   : > { %p1305_p5 = scmp.ge.s32.totalorder %s1833_s21, 1  ;;  %p168_p7 = scmp.lt.s32.totalorder %s1833_s21, 3 }
   0xd   : > { %p1914_p4 = por %p2218_p1, %p42_p0  ;;  %p1919_p6 = por %p161_p3, %p42_p0 }
   0xe   : > { %p1924_p8 = pnand %p1305_p5, %p168_p7  ;;  %s1835_s27 = smov [#allocation6]  }
   0xf   : > { %s2234_s24 = scalar_select %p1914_p4, 1, 0 }
  0x10   : > { %s2235_s25 = scalar_select %p1919_p6, 1, 0 }
  0x11   : > { %s2236_s26 = scalar_select %p1924_p8, 1, 0 }
  0x12   : > { %s180_s28 = sshll.u32 %s1835_s27, 4  ;;  %p1489_p9 = pneg %p1924_p8  ;;  %s1928_s28 = int_to_ptr.vmem [resolvable:$true] %s180_s28 }
  0x13   : > { %s1940_s30 = sadd.s32 1, %s1833_s21   ;;  %s29_s6 = sadd.s32 1, %s1829_s20 }
  0x14   : > { %p1935_p11 = pnand %p1489_p9, %p2218_p1  ;;  %s26_s7 = ssub.s32 %s1833_s21, %s1940_s30 }
  0x15   : > { %s2238_s1 = sld [smem:[#allocation19_spill]] }
  0x16   : > { %p2223_p13 = pneg %p1935_p11 }
  0x1b   : > { %s1639_s10 = scalar_lea.hbm %s2238_s1, 256 }
  0x1c   : > { %p1640_p12 = scmp.ne.s32.totalorder %s2238_s1, %s1639_s10  ;;  %p1646_p5 = scmp.lt.u32.totalorder %s1639_s10, %s2238_s1 }
  0x1e   : > { %p1642_p0 = pnand %p2223_p13, %p1640_p12 }
  0x20   : > { %p1643_p3 = pneg %p1642_p0 }
  0x22   : > { %p1648_p7 = pnand %p1646_p5, %p1643_p3 }
  0x24   : > { %1651 = shalt.err (!%p1648_p7)
}
  0x25   : > { %s1652_s15 = scalar_lea.vmem %s1928_s28, 256  ;;  %p1660_p2 = scmp.lt.s32.totalorder %s1928_s28, %s1928_s28 }
  0x26   : > { %p1653_p9 = scmp.ne.s32.totalorder %s1928_s28, %s1652_s15  ;;  %p1661_p12 = scmp.lt.s32.totalorder %s1652_s15, %s1652_s15 }
  0x28   : > { %p1655_p10 = pnand %p1653_p9, %p2223_p13  ;;  %p1662_p0 = por %p1661_p12, %p1660_p2 }
  0x2a   : > { %p1656_p1 = pneg %p1655_p10 }
  0x2c   : > { %p1663_p6 = pnand %p1662_p0, %p1656_p1 }
  0x2e   : > { %1666 = shalt.err (!%p1663_p6)
}
  0x2f   : > { %s2219_s16 = smov 64   ;;  %s2221_s17 = smov 4  }
  0x30   : > { %1492 = dma.hbm_to_vmem [thread:$0]  (!%p1935_p11), %s2238_s1, 256, %s1928_s28, [#allocation7], %s2219_s16, %s2219_s16, %s2221_s17  }
  0x31   : > { %p27_p1 = scmp.eq.s32.totalorder %s26_s7, 0  ;;  %p36_p2 = scmp.ne.s32.totalorder %s1829_s20, %s1825_s19 }
  0x32   : > { %p37_p6 = scmp.eq.s32.totalorder %s1833_s21, 0  ;;  %p1509_p10 = scmp.lt.s32.totalorder %s1833_s21, 2 }
  0x33   : > { %s1980_s8 = scalar_select %p27_p1, %s1829_s20, %s29_s6  }
  0x34   : > { %p38_p3 = por %p37_p6, %p36_p2  ;;  %p2240_p5 = scmp.eq.s32.totalorder %s1905_s22, 1 }
  0x35   : > { %2239 = sst [smem:[#allocation17_spill]] %s1980_s8  ;;  %s210_s10 = sand.u32 1, %s1833_s21  }
  0x36   : > { %p1984_p7 = por %p2240_p5, %p36_p2  ;;  %s212_s11 = sand.u32 1, %s1829_s20  }
  0x37   : > { %s1309_s12 = sshll.u32 %s212_s11, 3  ;;  %s1390_s13 = sshll.u32 %s1833_s21, 7 }
  0x38   : > { %s2241_s9 = scalar_select %p1984_p7, 1, 0 }
  0x39   : > { %s2242_s0 = sld [smem:[#allocation18_spill]]  ;;  %s214_s6 = scalar_lea.vmem [#allocation3], %s1309_s12 }
  0x3a   : > { %s221_s7 = sshll.u32 %s214_s6, 4  ;;  %p1998_p9 = pnand %p1509_p10, %p38_p3  ;;  %s1996_s7 = int_to_ptr.vmem [resolvable:$true] %s221_s7 }
  0x3b   : > { %s2005_s14 = scalar_lea.hbm %s2214_s2, %s1390_s13  ;;  %s235_s15 = scalar_lea.vmem [#allocation8], %s1309_s12 }
  0x3c   : > { %s2243_s23 = scalar_select %p1998_p9, 1, 0 }
  0x3d   : > { %s2007_s16 = sshll.u32 %s235_s15, 4  ;;  %s2009_s17 = scalar_lea.sflag [#allocation4], %s210_s10  ;;  %s2041_s16 = int_to_ptr.vmem [resolvable:$true] %s2007_s16 }
  0x3e   : > { %p2228_p0 = pneg %p1998_p9 }
  0x3f   : > { %s1994_s28 = scalar_lea.hbm %s2242_s0, %s1390_s13  ;;  %s1672_s27 = scalar_lea.hbm %s2242_s0, 256 }
  0x40   : > { %s1667_s6 = scalar_lea.hbm %s1994_s28, 128  ;;  %p1673_p6 = scmp.lt.u32.totalorder %s1994_s28, %s2242_s0 }
  0x41   : > { %p1668_p12 = scmp.ne.s32.totalorder %s1994_s28, %s1667_s6  ;;  %p1674_p10 = scmp.lt.u32.totalorder %s1672_s27, %s1667_s6 }
  0x42   : > { %p1676_p5 = scmp.lt.u32.totalorder %s1667_s6, %s1994_s28 }
  0x43   : > { %p1670_p1 = pnand %p2228_p0, %p1668_p12  ;;  %p1675_p3 = por %p1674_p10, %p1673_p6 }
  0x45   : > { %p1671_p2 = pneg %p1670_p1  ;;  %p1677_p13 = por %p1676_p5, %p1675_p3 }
  0x47   : > { %p1678_p7 = pnand %p1677_p13, %p1671_p2 }
  0x49   : > { %1681 = shalt.err (!%p1678_p7)
}
  0x4a   : > { %s1682_s10 = scalar_lea.vmem %s1996_s7, 128  ;;  %s1838_s1 = smov [#allocation3]  }
  0x4b   : > { %p1683_p12 = scmp.ne.s32.totalorder %s1996_s7, %s1682_s10  ;;  %s1687_s8 = sshll.u32 %s1838_s1, 4  ;;  %s1688_s8 = int_to_ptr.vmem [resolvable:$false] %s1687_s8 }
  0x4c   : > { %s1689_s12 = scalar_lea.vmem %s1688_s8, 256  ;;  %p1690_p8 = scmp.lt.s32.totalorder %s1996_s7, %s1688_s8 }
  0x4d   : > { %p1685_p1 = pnand %p1683_p12, %p2228_p0  ;;  %p1691_p6 = scmp.lt.s32.totalorder %s1689_s12, %s1682_s10 }
  0x4f   : > { %p1686_p4 = pneg %p1685_p1  ;;  %p1692_p10 = por %p1691_p6, %p1690_p8 }
  0x51   : > { %p1693_p3 = pnand %p1692_p10, %p1686_p4 }
  0x53   : > { %1696 = shalt.err (!%p1693_p3)
}
  0x54   : > { %s2244_s15 = smov 4   ;;  %s2245_s6 = smov 64  }
  0x55   : > { %1499 = dma.hbm_to_vmem [thread:$0]  (!%p1998_p9), %s1994_s28, 128, %s1996_s7, %s2009_s17, %s2245_s6, %s2245_s6, %s2244_s15  }
  0x56   : > { %s1839_s27 = smov [#allocation9]   ;;  %s1697_s1 = scalar_lea.hbm %s2215_s3, 6912 }
  0x57   : > { %s193_s11 = sshll.u32 %s1839_s27, 4  ;;  %p1698_p4 = scmp.ne.s32.totalorder %s2215_s3, %s1697_s1  ;;  %s194_s11 = int_to_ptr.vmem [resolvable:$true] %s193_s11 }
  0x58   : > { %p2246_p8 = pneg %p1935_p11  ;;  %p1704_p2 = scmp.lt.u32.totalorder %s1697_s1, %s2215_s3 }
  0x5a   : > { %p1700_p13 = pnand %p1698_p4, %p2246_p8 }
  0x5c   : > { %p1701_p7 = pneg %p1700_p13 }
  0x5e   : > { %p1706_p5 = pnand %p1704_p2, %p1701_p7 }
  0x60   : > { %1709 = shalt.err (!%p1706_p5)
}
  0x61   : > { %s1710_s28 = scalar_lea.vmem %s194_s11, 6912  ;;  %p2247_p1 = pmov %p2246_p8 }
  0x62   : > { %p1711_p12 = scmp.ne.s32.totalorder %s194_s11, %s1710_s28  ;;  %p1718_p3 = scmp.lt.s32.totalorder %s194_s11, %s194_s11 }
  0x63   : > { %p1719_p0 = scmp.lt.s32.totalorder %s1710_s28, %s1710_s28 }
  0x64   : > { %p1713_p6 = pnand %p1711_p12, %p2247_p1 }
  0x65   : > { %p1720_p9 = por %p1719_p0, %p1718_p3 }
  0x66   : > { %p1714_p10 = pneg %p1713_p6 }
  0x68   : > { %p1721_p4 = pnand %p1720_p9, %p1714_p10 }
  0x6a   : > { %1724 = shalt.err (!%p1721_p4)
}
  0x6b   : > { %s1840_s7 = smov 192   ;;  %s1841_s0 = smov 12  }
  0x6c   : > { %1495 = dma.hbm_to_vmem [thread:$0]  (!%p1935_p11), %s2215_s3, 6912, %s194_s11, [#allocation7], %s1840_s7, %s1840_s7, %s1841_s0  }
  0x6d   : > { %s1725_s13 = scalar_lea.hbm %s2005_s14, 128  ;;  %p2248_p13 = scmp.ne.s32.totalorder %s2243_s23, 0 }
  0x6e   : > { %p1726_p8 = scmp.ne.s32.totalorder %s2005_s14, %s1725_s13  ;;  %s1730_s8 = scalar_lea.hbm %s2214_s2, 256 }
  0x6f   : > { %p2249_p7 = pneg %p2248_p13  ;;  %p1731_p2 = scmp.lt.u32.totalorder %s2005_s14, %s2214_s2 }
  0x70   : > { %p1732_p5 = scmp.lt.u32.totalorder %s1730_s8, %s1725_s13  ;;  %p1734_p1 = scmp.lt.u32.totalorder %s1725_s13, %s2005_s14 }
  0x71   : > { %p1728_p0 = pnand %p1726_p8, %p2249_p7 }
  0x72   : > { %p1733_p12 = por %p1732_p5, %p1731_p2 }
  0x73   : > { %p1729_p9 = pneg %p1728_p0 }
  0x74   : > { %p1735_p6 = por %p1734_p1, %p1733_p12 }
  0x76   : > { %p1736_p10 = pnand %p1735_p6, %p1729_p9 }
  0x78   : > { %1739 = shalt.err (!%p1736_p10)
}
  0x79   : > { %s1740_s29 = scalar_lea.vmem %s2041_s16, 128  ;;  %p2250_p3 = pmov %p2249_p7 }
  0x7a   : > { %p1741_p11 = scmp.ne.s32.totalorder %s2041_s16, %s1740_s29  ;;  %s1842_s11 = smov [#allocation8]  }
  0x7b   : > { %s1745_s7 = sshll.u32 %s1842_s11, 4  ;;  %s1746_s7 = int_to_ptr.vmem [resolvable:$false] %s1745_s7 }
  0x7c   : > { %p1743_p4 = pnand %p1741_p11, %p2250_p3  ;;  %s1747_s0 = scalar_lea.vmem %s1746_s7, 256 }
  0x7d   : > { %p1748_p7 = scmp.lt.s32.totalorder %s2041_s16, %s1746_s7  ;;  %p1749_p0 = scmp.lt.s32.totalorder %s1747_s0, %s1740_s29 }
  0x7e   : > { %p1744_p8 = pneg %p1743_p4 }
  0x7f   : > { %p1750_p2 = por %p1749_p0, %p1748_p7 }
  0x81   : > { %p1751_p5 = pnand %p1750_p2, %p1744_p8 }
  0x83   : > { %1754 = shalt.err (!%p1751_p5)
}
  0x84   : > { %1502 = dma.hbm_to_vmem [thread:$0]  (!%p2248_p13), %s2005_s14, 128, %s2041_s16, %s2009_s17, %s2245_s6, %s2245_s6, %s2244_s15  }
  0x85   : > { %p2251_p9 = scmp.ne.s32.totalorder %s2236_s26, 0 }
  0x86   : > { %s256_s20 = sand.u32 (!%p2251_p9), 1, %s1905_s22   ;;  %s2094_s27 = sand.u32 (!%p2251_p9), 1, %s1825_s19  }
  0x87   : > { %254 = sbr.rel (%p2251_p9) target bundleno = 1194 (0x4aa), region = 40  ;;  %s1316_s13 = sshll.u32 (!%p2251_p9), %s2094_s27, 3 }
  0x88   : > { %s257_s10 = scalar_lea.sflag (!%p2251_p9), [#allocation4], %s256_s20  ;;  %s260_s23 = scalar_lea.vmem (!%p2251_p9), [#allocation3], %s1316_s13 }
  0x89   : > { %p2252_p12 = scmp.ne.s32.totalorder (!%p2251_p9), %s2234_s24, 0 }
  0x8e   : > { %1800 = dma.done.wait (%p2252_p12), %s257_s10, 128  }
  0x8f   : > { %1802 = vsyncadd (%p2252_p12), %s257_s10, 4294967168  ;;  %p2253_p13 = scmp.eq.s32.totalorder %s1905_s22, 0 }
  0x91   : > { %1804 = dma.done.wait (%p2253_p13), [#allocation7], 256   ;;  %p2254_p1 = pmov %p2253_p13 }
  0x92   : > { %s2105_s26 = scalar_lea.vmem [#allocation8], %s1316_s13 }
  0x93   : > { %1806 = vsyncadd (%p2254_p1), [#allocation7], 4294967040 }
  0x94   : > { %1808 = dma.done.wait (%p2252_p12), %s257_s10, 128  }
  0x95   : > { %1810 = vsyncadd (%p2252_p12), %s257_s10, 4294967168  ;;  %p2255_p6 = pmov %p2254_p1 }
  0x96   : > { %p2256_p10 = pmov %p2254_p1 }
  0x97   : > { %1812 = dma.done.wait (%p2255_p6), [#allocation7], 6912  }
  0x98   : > { %1814 = vsyncadd (%p2256_p10), [#allocation7], 4294960384  ;;  %v1843_v0 = vmov 0.0   ;;  %vm1844_vm0 = vmmov 0   ;;  %v2121_v1 = vld [vmem:[%s260_s23] sm:$0xff]   ;;  %v1562_v2 = vld [vmem:[#allocation6] sm:$0xff]  }
  0x99   : > { %1427 = vmatprep.subr.bf16.mxu0 %v1843_v0  ;;  %1429 = vmatprep.mubr.msk.bf16.mxu0 %vm1844_vm0, %v1843_v0  ;;  %vm327_vm1 = vcmask 130048   ;;  %v1563_v8 = vld [vmem:[#allocation6] sm:$0xff]   ;;  %v1564_v9 = vld [vmem:[#allocation6 + $0x8] sm:$0xff]   ;;  %v1566_v10 = vld [vmem:[%s2105_s26] sm:$0xff]   ;;  %s1845_s24 = smov 96   ;;  %s1846_s16 = smov 16  }
  0x9a   : > { %1445 = vmatprep.subr.bf16.mxu1 %v1843_v0  ;;  %1447 = vmatprep.mubr.msk.bf16.mxu1 %vm1844_vm0, %v1843_v0  ;;  %v1565_v21 = vld [vmem:[#allocation6 + $0x8] sm:$0xff]   ;;  %s1847_s17 = smov 112   ;;  %v1569_v28 = vld [vmem:[#allocation9 + $0x4] ss:$12 sps:$4 sm:$0xff]   ;;  %v1575_v31 = vld [vmem:[#allocation9 + $0x34] ss:$12 sps:$4 sm:$0xff]  }
  0x9b   : > { %1428 = vmatpush3.bf16.msra.mxu0 %v2121_v1  ;;  %v1567_v27 = vld [vmem:[#allocation9] ss:$12 sps:$4 sm:$0xff]   ;;  %v1572_v29 = vld [vmem:[#allocation9 + $0x1c] ss:$12 sps:$4 sm:$0xff]   ;;  %v1570_v30 = vld [vmem:[#allocation9 + $0x18] ss:$12 sps:$4 sm:$0xff]  }
  0x9c   : > { %1433 = vmatprep.subr.bf16.mxu0 %v1843_v0  ;;  %v1594_v32 = vld [vmem:[#allocation9 + $0xc8] ss:$12 sps:$4 sm:$0xff]   ;;  %v1573_v34 = vld [vmem:[#allocation9 + $0x30] ss:$12 sps:$4 sm:$0xff]   ;;  %v1599_v35 = vld [vmem:[#allocation9 + $0xe0] ss:$12 sps:$4 sm:$0xff]  }
  0x9d   : > { %v1595_v33 = vld [vmem:[#allocation9 + $0x8] ss:$12 sps:$4 sm:$0xff]   ;;  %v1578_v36 = vld [vmem:[#allocation9 + $0x4c] ss:$12 sps:$4 sm:$0xff]   ;;  %v1581_v41 = vld [vmem:[#allocation9 + $0x64] ss:$12 sps:$4 sm:$0xff]  }
  0x9e   : > { %1430 = vmatmul.mubr.msk.bf16.vlgmr.msra.gmra.mrb[0].mxu0 %vm327_vm1, %v1562_v2  ;;  %v1600_v37 = vld [vmem:[#allocation9 + $0x20] ss:$12 sps:$4 sm:$0xff]   ;;  %v1604_v38 = vld [vmem:[#allocation9 + $0xf8] ss:$12 sps:$4 sm:$0xff]   ;;  %v1576_v40 = vld [vmem:[#allocation9 + $0x48] ss:$12 sps:$4 sm:$0xff]  }
  0x9f   : > { %1435 = vmatprep.mubr.msk.bf16.mxu0 %vm1844_vm0, %v1843_v0  ;;  %v1605_v42 = vld [vmem:[#allocation9 + $0x38] ss:$12 sps:$4 sm:$0xff]   ;;  %v1609_v43 = vld [vmem:[#allocation9 + $0x110] ss:$12 sps:$4 sm:$0xff]   ;;  %v1579_v44 = vld [vmem:[#allocation9 + $0x60] ss:$12 sps:$4 sm:$0xff]  }
  0xa0   : > { %v1584_v45 = vld [vmem:[#allocation9 + $0x7c] ss:$12 sps:$4 sm:$0xff]   ;;  %vm495_vm2 = vcmask 523392   ;;  %v1582_v49 = vld [vmem:[#allocation9 + $0x78] ss:$12 sps:$4 sm:$0xff]   ;;  %vm318_vm3 = vcmask 392192  }
  0xa1   : > { %v1610_v46 = vld [vmem:[#allocation9 + $0x50] ss:$12 sps:$4 sm:$0xff]   ;;  %v1614_v47 = vld [vmem:[#allocation9 + $0x128] ss:$12 sps:$4 sm:$0xff]   ;;  %v1590_v53 = vld [vmem:[#allocation9 + $0xac] ss:$12 sps:$4 sm:$0xff]  }
  0xa2   : > { %v1587_v50 = vld [vmem:[#allocation9 + $0x94] ss:$12 sps:$4 sm:$0xff]   ;;  %v1585_v52 = vld [vmem:[#allocation9 + $0x90] ss:$12 sps:$4 sm:$0xff]   ;;  %v1596_v58 = vld [vmem:[#allocation9 + $0xd8] ss:$12 sps:$4 sm:$0xff]  }
  0xa3   : > { %v1615_v51 = vld [vmem:[#allocation9 + $0x68] ss:$12 sps:$4 sm:$0xff]   ;;  %v1593_v55 = vld [vmem:[#allocation9 + $0xc4] ss:$12 sps:$4 sm:$0xff]   ;;  %v1591_v56 = vld [vmem:[#allocation9 + $0xc0] ss:$12 sps:$4 sm:$0xff]  }
  0xa4   : > { %v1588_v54 = vld [vmem:[#allocation9 + $0xa8] ss:$12 sps:$4 sm:$0xff]   ;;  %v1601_v60 = vld [vmem:[#allocation9 + $0xf0] ss:$12 sps:$4 sm:$0xff]   ;;  %v1608_v61 = vld [vmem:[#allocation9 + $0x10c] ss:$12 sps:$4 sm:$0xff]  }
  0xa5   : > { %v1598_v57 = vld [vmem:[#allocation9 + $0xdc] ss:$12 sps:$4 sm:$0xff]   ;;  %v1603_v59 = vld [vmem:[#allocation9 + $0xf4] ss:$12 sps:$4 sm:$0xff]   ;;  %v1613_v63 = vld [vmem:[#allocation9 + $0x124] ss:$12 sps:$4 sm:$0xff]  }
  0xa6   : > { %v1606_v62 = vld [vmem:[#allocation9 + $0x108] ss:$12 sps:$4 sm:$0xff]   ;;  %v1611_v2 = vld [vmem:[#allocation9 + $0x120] ss:$12 sps:$4 sm:$0xff]   ;;  %319 = vst.msk [vmem:[#allocation2] sm:$0xff] %vm318_vm3, %v2121_v1  ;;  %vm613_vm4 = vcmask 261120  }
  0xa7   : > { %s1848_s14 = smov 64   ;;  %s1849_s15 = smov 48   ;;  %vm553_vm5 = vcmask 916992   ;;  %vm611_vm6 = vcmask 1048448   ;;  %vm377_vm7 = vcmask 785792   ;;  %vm435_vm8 = vcmask 1048320  }
  0xa8   : > { %s1473_s8 = smul.u32 48, %s2094_s27  ;;  %s1179_s0 = scalar_lea.sflag [#allocation5], %s2094_s27 }
  0xa9   : > { %s1474_s29 = smul.u32 768, %s1905_s22  ;;  %p2257_p3 = scmp.ne.s32.totalorder %s2241_s9, 0 }
  0xaa   : > { %s308_s12 = scalar_lea.vmem [#allocation10], %s1473_s8  ;;  %s1851_s13 = smov [#allocation10]  }
  0xab   : > { %s1192_s28 = sshll.u32 %s308_s12, 4  ;;  %s2168_s22 = scalar_lea.hbm %s2217_s5, %s1474_s29  ;;  %s2163_s28 = int_to_ptr.vmem [resolvable:$true] %s1192_s28 }
  0xac   : > { %s1755_s20 = scalar_lea.vmem %s2163_s28, 768  ;;  %s1759_s10 = sshll.u32 %s1851_s13, 4  ;;  %s1760_s10 = int_to_ptr.vmem [resolvable:$false] %s1759_s10 }
  0xad   : > { %p1756_p11 = scmp.ne.s32.totalorder %s2163_s28, %s1755_s20  ;;  %s1761_s23 = scalar_lea.vmem %s1760_s10, 1536 }
  0xae   : > { %p1762_p7 = scmp.lt.s32.totalorder %s2163_s28, %s1760_s10  ;;  %p1763_p0 = scmp.lt.s32.totalorder %s1761_s23, %s1755_s20 }
  0xaf   : > { %p1757_p4 = pnand %p1756_p11, %p2257_p3 }
  0xb0   : > { %p1764_p2 = por %p1763_p0, %p1762_p7 }
  0xb1   : > { %p1758_p8 = pneg %p1757_p4 }
  0xb3   : > { %p1765_p5 = pnand %p1764_p2, %p1758_p8 }
 0x171   : > { %v365_v3 = vpop.f32.mrb[0].mxu0 }
 0x172   : > { %v1431_v4 = vpop.f32.mrb[1].mxu0 }
 0x173   : > { %v368_v5 = vpop.f32.mrb[2].mxu0  ;;  %v1619_v4 = vld [vmem:[#allocation9 + $0x140] ss:$12 sps:$4 sm:$0xff]  }
 0x174   : > { %v2128_v6 = vpack.c.bf16 %v368_v5, %v365_v3  ;;  %v1432_v7 = vpop.f32.mrb[3].mxu0  ;;  %v1618_v3 = vld [vmem:[#allocation9 + $0x13c] ss:$12 sps:$4 sm:$0xff]   ;;  %v1616_v5 = vld [vmem:[#allocation9 + $0x138] ss:$12 sps:$4 sm:$0xff]  }
 0x175   : > { %v1620_v7 = vld [vmem:[#allocation9 + $0x80] ss:$12 sps:$4 sm:$0xff]  }
 0x176   : > { %1434 = vmatpush3.bf16.msra.mxu0 %v2128_v6 }
 0x177   : > { %1439 = vmatprep.subr.bf16.mxu0 %v1843_v0 }
 0x179   : > { %1436 = vmatmul.mubr.msk.bf16.vlgmr.msra.gmra.mrb[4].mxu0 %vm327_vm1, %v1563_v8 }
 0x17a   : > { %1440 = vmatpush3.bf16.msra.mxu0 %v2121_v1  ;;  %1441 = vmatprep.mubr.msk.bf16.mxu0 %vm1844_vm0, %v1843_v0 }
 0x17b   : > { %1451 = vmatprep.subr.bf16.mxu0 %v1843_v0 }
 0x181   : > { %1442 = vmatmul.mubr.msk.bf16.vlgmr.msra.gmra.mrb[8].mxu0 %vm327_vm1, %v1564_v9  ;;  %v1623_v9 = vld [vmem:[#allocation9 + $0x154] ss:$12 sps:$4 sm:$0xff]  }
 0x182   : > { %1452 = vmatpush3.bf16.msra.mxu0 %v2121_v1  ;;  %1453 = vmatprep.mubr.msk.bf16.mxu0 %vm1844_vm0, %v1843_v0 }
 0x183   : > { %1402 = vmatprep.subr.bf16.mxu0 %v1594_v32  ;;  %v692_v32 = vlaneseq }
 0x189   : > { %1454 = vmatmul.mubr.msk.bf16.vlgmr.msra.gmra.mrb[12].mxu0 %vm327_vm1, %v1566_v10  ;;  %v1624_v10 = vld [vmem:[#allocation9 + $0x158] ss:$12 sps:$4 sm:$0xff]  }
 0x18a   : > { %1403 = vmatpush3.bf16.msra.mxu0 %v1595_v33  ;;  %v693_v33 = vshrl.u32 %v692_v32, 7 }
 0x18b   : > { %1404 = vmatprep.subr.bf16.mxu0 %v1599_v35 }
 0x18e   : > { %1405 = vmatpush3.bf16.msra.mxu0 %v1600_v37 }
 0x18f   : > { %1406 = vmatprep.subr.bf16.mxu0 %v1604_v38 }
 0x192   : > { %1407 = vmatpush3.bf16.msra.mxu0 %v1605_v42  ;;  %v694_v42 = vsub.s32 0, %v693_v33 }
 0x193   : > { %1408 = vmatprep.subr.bf16.mxu0 %v1609_v43  ;;  %v698_v43 = vsub.s32 1, %v693_v33 }
 0x196   : > { %1409 = vmatpush3.bf16.msra.mxu0 %v1610_v46 }
 0x197   : > { %1410 = vmatprep.subr.bf16.mxu0 %v1614_v47 }
 0x19a   : > { %1411 = vmatpush3.bf16.msra.mxu0 %v1615_v51 }
 0x19b   : > { %1412 = vmatprep.subr.bf16.mxu0 %v1619_v4 }
 0x19e   : > { %1413 = vmatpush3.bf16.msra.mxu0 %v1620_v7 }
 0x19f   : > { %1414 = vmatprep.subr.bf16.mxu0 %v1624_v10 }
 0x24c   : > { %v423_v11 = vpop.f32.mrb[4].mxu0 }
 0x24d   : > { %v1437_v12 = vpop.f32.mrb[5].mxu0 }
 0x24e   : > { %v426_v13 = vpop.f32.mrb[6].mxu0  ;;  %v1625_v12 = vld [vmem:[#allocation9 + $0x98] ss:$12 sps:$4 sm:$0xff]  }
 0x24f   : > { %v430_v14 = vpack.c.bf16 %v426_v13, %v423_v11  ;;  %v1438_v15 = vpop.f32.mrb[7].mxu0  ;;  %v1621_v11 = vld [vmem:[#allocation9 + $0x150] ss:$12 sps:$4 sm:$0xff]   ;;  %v1628_v13 = vld [vmem:[#allocation9 + $0x16c] ss:$12 sps:$4 sm:$0xff]   ;;  %1415 = vmatpush3.bf16.msra.mxu0 %v1625_v12 }
 0x250   : > { %v1626_v15 = vld [vmem:[#allocation9 + $0x168] ss:$12 sps:$4 sm:$0xff]  }
 0x251   : > { %432 = vrot.lane.b32.xlu0 %v430_v14, %s1845_s24  ;;  %v1629_v14 = vld [vmem:[#allocation9 + $0x170] ss:$12 sps:$4 sm:$0xff]  }
 0x252   : > { %1416 = vmatprep.subr.bf16.mxu0 %v1629_v14 }
 0x254   : > { %v483_v16 = vpop.f32.mrb[8].mxu0 }
 0x255   : > { %v1443_v17 = vpop.f32.mrb[9].mxu0 }
 0x256   : > { %v486_v18 = vpop.f32.mrb[10].mxu0 }
 0x257   : > { %v490_v19 = vpack.c.bf16 %v486_v18, %v483_v16  ;;  %v1444_v20 = vpop.f32.mrb[11].mxu0  ;;  %v1630_v16 = vld [vmem:[#allocation9 + $0xb0] ss:$12 sps:$4 sm:$0xff]  }
 0x258   : > { %1417 = vmatpush3.bf16.msra.mxu0 %v1630_v16 }
 0x259   : > { %1446 = vmatpush3.bf16.msra.mxu1 %v490_v19  ;;  %492 = vrot.lane.b32.xlu0 %v490_v19, %s1846_s16 }
 0x25a   : > { %998 = vmatprep.subr.bf16.mxu1 %v1569_v28  ;;  %1457 = vmatprep.subr.bf16.mxu0 %v1843_v0  ;;  %v1638_v28 = vld [vmem:[#allocation9 + $0x19c] ss:$12 sps:$4 sm:$0xff]  }
 0x25c   : > { %1448 = vmatmul.mubr.msk.bf16.vlgmr.msra.gmra.mrb[0].mxu1 %vm327_vm1, %v1565_v21  ;;  %v599_v22 = vpop.f32.mrb[12].mxu0  ;;  %v1634_v21 = vld [vmem:[#allocation9 + $0x184] ss:$12 sps:$4 sm:$0xff]  }
 0x25d   : > { %v1455_v23 = vpop.f32.mrb[13].mxu0  ;;  %999 = vmatpush1.bf16.msra.mxu1 %v1567_v27 }
 0x25e   : > { %v602_v24 = vpop.f32.mrb[14].mxu0  ;;  %1000 = vmatprep.subr.bf16.mxu1 %v1572_v29  ;;  %v1636_v29 = vld [vmem:[#allocation9 + $0x198] ss:$12 sps:$4 sm:$0xff]  }
 0x25f   : > { %v1456_v25 = vpop.f32.mrb[15].mxu0  ;;  %v606_v26 = vpack.c.bf16 %v602_v24, %v599_v22 }
 0x260   : > { %v1631_v25 = vld [vmem:[#allocation9 + $0x188] ss:$12 sps:$4 sm:$0xff]  }
 0x261   : > { %608 = vrot.lane.b32.xlu0 %v606_v26, %s1847_s17  ;;  %1001 = vmatpush1.bf16.msra.mxu1 %v1570_v30  ;;  %v1632_v26 = vld [vmem:[#allocation9 + $0x180] ss:$12 sps:$4 sm:$0xff]   ;;  %v1850_v30 = vmov 0  }
 0x262   : > { %1002 = vmatprep.subr.bf16.mxu1 %v1575_v31 }
 0x265   : > { %1003 = vmatpush1.bf16.msra.mxu1 %v1573_v34  ;;  %v702_v34 = vsub.s32 2, %v693_v33 }
 0x266   : > { %1004 = vmatprep.subr.bf16.mxu1 %v1578_v36  ;;  %v690_v36 = vld [vmem:[%s2216_s4] sm:$0x7] }
 0x267   : > { %v699_v51 = vrot.slane %v690_v36, %v698_v43 }
 0x269   : > { %1005 = vmatpush1.bf16.msra.mxu1 %v1576_v40  ;;  %v703_v40 = vrot.slane %v690_v36, %v702_v34 }
 0x26a   : > { %1006 = vmatprep.subr.bf16.mxu1 %v1581_v41 }
 0x26d   : > { %1007 = vmatpush1.bf16.msra.mxu1 %v1579_v44 }
 0x26e   : > { %1008 = vmatprep.subr.bf16.mxu1 %v1584_v45 }
 0x271   : > { %1009 = vmatpush1.bf16.msra.mxu1 %v1582_v49  ;;  %v695_v49 = vrot.slane %v690_v36, %v694_v42 }
 0x272   : > { %1010 = vmatprep.subr.bf16.mxu1 %v1587_v50 }
 0x275   : > { %1011 = vmatpush1.bf16.msra.mxu1 %v1585_v52 }
 0x276   : > { %1012 = vmatprep.subr.bf16.mxu1 %v1590_v53 }
 0x279   : > { %1013 = vmatpush1.bf16.msra.mxu1 %v1588_v54 }
 0x27a   : > { %1014 = vmatprep.subr.bf16.mxu1 %v1593_v55 }
 0x27d   : > { %1015 = vmatpush1.bf16.msra.mxu1 %v1591_v56 }
 0x27e   : > { %1016 = vmatprep.subr.bf16.mxu1 %v1598_v57 }
 0x281   : > { %1017 = vmatpush1.bf16.msra.mxu1 %v1596_v58 }
 0x282   : > { %1018 = vmatprep.subr.bf16.mxu1 %v1603_v59 }
 0x285   : > { %1019 = vmatpush1.bf16.msra.mxu1 %v1601_v60 }
 0x286   : > { %1020 = vmatprep.subr.bf16.mxu1 %v1608_v61 }
 0x289   : > { %1021 = vmatpush1.bf16.msra.mxu1 %v1606_v62 }
 0x28a   : > { %1022 = vmatprep.subr.bf16.mxu1 %v1613_v63 }
 0x28d   : > { %1023 = vmatpush1.bf16.msra.mxu1 %v1611_v2 }
 0x28e   : > { %1024 = vmatprep.subr.bf16.mxu1 %v1618_v3 }
 0x291   : > { %1025 = vmatpush1.bf16.msra.mxu1 %v1616_v5 }
 0x292   : > { %1026 = vmatprep.subr.bf16.mxu1 %v1623_v9 }
 0x295   : > { %1027 = vmatpush1.bf16.msra.mxu1 %v1621_v11 }
 0x296   : > { %1028 = vmatprep.subr.bf16.mxu1 %v1628_v13 }
 0x299   : > { %1029 = vmatpush1.bf16.msra.mxu1 %v1626_v15 }
 0x29a   : > { %1041 = vmatprep.subr.bf16.mxu1 %v1634_v21 }
 0x2c3   : > { %v2144_v39 = vpop.permute.xlu0 %432 }
 0x2c4   : > { %437 = vst.msk [vmem:[#allocation2 + $0x8] sm:$0xff] %vm327_vm1, %v2144_v39 }
 0x2cb   : > { %v493_v48 = vpop.permute.xlu0 %492 }
 0x2cc   : > { %496 = vst.msk [vmem:[#allocation2 + $0x8] sm:$0xff] %vm495_vm2, %v493_v48 }
 0x2d3   : > { %v609_v8 = vpop.permute.xlu0 %608 }
 0x2d4   : > { %614 = vst.msk [vmem:[#allocation2 + $0x10] sm:$0xff] %vm613_vm4, %v609_v8 }
 0x2db   : > { %v617_v31 = vld [vmem:[#allocation2 + $0x10] sm:$0xff] }
 0x32f   : > { %v541_v1 = vpop.f32.mrb[0].mxu1 }
 0x330   : > { %v1449_v17 = vpop.f32.mrb[1].mxu1 }
 0x331   : > { %v544_v18 = vpop.f32.mrb[2].mxu1 }
 0x332   : > { %v548_v19 = vpack.c.bf16 %v544_v18, %v541_v1  ;;  %v1450_v20 = vpop.f32.mrb[3].mxu1 }
 0x334   : > { %550 = vrot.lane.b32.xlu1 %v548_v19, %s1848_s14 }
 0x338   : > { %374 = vrot.lane.b32.xlu1 %v2128_v6, %s1849_s15  ;;  %v1635_v6 = vld [vmem:[#allocation9 + $0x1a0] ss:$12 sps:$4 sm:$0xff]  }
 0x3a6   : > { %v551_v22 = vpop.permute.xlu1 %550 }
 0x3a7   : > { %554 = vst.msk [vmem:[#allocation2 + $0x8] sm:$0xff] %vm553_vm5, %v551_v22 }
 0x3a8   : > { %612 = vst.msk [vmem:[#allocation2 + $0x8] sm:$0xff] %vm611_vm6, %v609_v8 }
 0x3aa   : > { %v375_v23 = vpop.permute.xlu1 %374 }
 0x3ab   : > { %378 = vst.msk [vmem:[#allocation2] sm:$0xff] %vm377_vm7, %v375_v23 }
 0x3ac   : > { %436 = vst.msk [vmem:[#allocation2] sm:$0xff] %vm435_vm8, %v2144_v39 }
 0x3af   : > { %v616_v24 = vld [vmem:[#allocation2 + $0x8] sm:$0xff] }
 0x3b0   : > { %1030 = vmatprep.mubr.bf16.mxu1 %v616_v24  ;;  %1116 = vmatprep.mubr.bf16.mxu0 %v616_v24 }
 0x3b3   : > { %v615_v27 = vld [vmem:[#allocation2] sm:$0xff] }
 0x3b4   : > { %1031 = vmatmul.mubr.bf16.vlgmr.msra.gmra.mrb[4].mxu1 %v615_v27  ;;  %1117 = vmatmul.mubr.bf16.vlgmr.msra.gmra.mrb[16].mxu0 %v615_v27 }
 0x3b5   : > { %1458 = vmatpush3.bf16.msra.mxu0 %v1631_v25  ;;  %1042 = vmatpush1.bf16.msra.mxu1 %v1632_v26 }
 0x3b6   : > { %1459 = vmatprep.subr.bf16.mxu0 %v1843_v0  ;;  %1461 = vmatprep.mubr.msk.bf16.mxu0 %vm1844_vm0, %v1843_v0 }
 0x3b7   : > { %1043 = vmatprep.subr.bf16.mxu1 %v1638_v28  ;;  %1073 = vmatprep.mubr.bf16.mxu1 %v1850_v30 }
 0x3b9   : > { %1460 = vmatpush3.bf16.msra.mxu0 %v1635_v6  ;;  %1044 = vmatpush1.bf16.msra.mxu1 %v1636_v29 }
 0x3bc   : > { %1462 = vmatmul.mubr.msk.bf16.vlgmr.msra.gmra.mrb[20].mxu0 %vm613_vm4, %v617_v31 }
 0x3c0   : > { %1385 = vmatmul.mubr.msk.bf16.vlgmr.msra.gmra.mrb[4].mxu1 %vm613_vm4, %v617_v31 }
 0x487   : > { %v1418_v35 = vpop.f32.mrb[16].mxu0 }
 0x488   : > { %v1419_v0 = vpop.f32.mrb[17].mxu0 }
 0x489   : > { %v1420_v37 = vadd.f32 %v1419_v0, %v1418_v35  ;;  %v1421_v38 = vpop.f32.mrb[18].mxu0 }
 0x48a   : > { %v1422_v39 = vpop.f32.mrb[19].mxu0 }
 0x48b   : > { %v1423_v41 = vadd.f32 %v1422_v39, %v1421_v38  ;;  %v1119_v44 = vadd.f32 %v1420_v37, %v703_v40 }
 0x48d   : > { %v1122_v48 = vadd.f32 %v1423_v41, %v703_v40 }
 0x48f   : > { %v1159_v45 = vpop.f32.mrb[20].mxu0 }
 0x490   : > { %v1160_v46 = vadd.f32 %v1159_v45, %v1119_v44  ;;  %v1463_v47 = vpop.f32.mrb[21].mxu0 }
 0x491   : > { %v1162_v50 = vpop.f32.mrb[22].mxu0 }
 0x492   : > { %v1168_v52 = vmax.f32 %v1160_v46, 0.0  ;;  %v1163_v53 = vadd.f32 %v1162_v50, %v1122_v48  ;;  %v1464_v54 = vpop.f32.mrb[23].mxu0 }
 0x493   : > { %v1075_v55 = vpop.f32.mrb[4].mxu1 }
 0x494   : > { %1174 = vst [vmem:[%s308_s12 + $0x10] sm:$0xff] %v1168_v52  ;;  %v1171_v56 = vmax.f32 %v1163_v53, 0.0  ;;  %v1465_v57 = vadd.f32 %v1075_v55, %v695_v49  ;;  %v1077_v58 = vpop.f32.mrb[5].mxu1 }
 0x495   : > { %v1466_v59 = vadd.f32 %v1077_v58, %v699_v51  ;;  %v1079_v60 = vpop.f32.mrb[6].mxu1 }
 0x496   : > { %1177 = vst [vmem:[%s308_s12 + $0x28] sm:$0xff] %v1171_v56  ;;  %v1166_v61 = vmax.f32 %v1465_v57, 0.0  ;;  %v1467_v62 = vadd.f32 %v1079_v60, %v695_v49  ;;  %v1081_v63 = vpop.f32.mrb[7].mxu1 }
 0x497   : > { %v1167_v2 = vmax.f32 %v1466_v59, 0.0  ;;  %v1468_v3 = vadd.f32 %v1081_v63, %v699_v51 }
 0x498   : > { %1172 = vst [vmem:[%s308_s12] sm:$0xff] %v1166_v61  ;;  %v1169_v4 = vmax.f32 %v1467_v62, 0.0 }
 0x499   : > { %1173 = vst [vmem:[%s308_s12 + $0x8] sm:$0xff] %v1167_v2  ;;  %v1170_v5 = vmax.f32 %v1468_v3, 0.0 }
 0x49a   : > { %1175 = vst [vmem:[%s308_s12 + $0x18] sm:$0xff] %v1169_v4 }
 0x49b   : > { %1176 = vst [vmem:[%s308_s12 + $0x20] sm:$0xff] %v1170_v5 }
 0x49c   : > { %1768 = shalt.err (!%p1765_p5)
}
 0x49d   : > { %s1769_s26 = scalar_lea.hbm %s2168_s22, 768  ;;  %s1773_s17 = scalar_lea.hbm %s2217_s5, 1536 }
 0x49e   : > { %p1770_p9 = scmp.ne.s32.totalorder %s2168_s22, %s1769_s26  ;;  %p1774_p1 = scmp.lt.u32.totalorder %s2168_s22, %s2217_s5 }
 0x49f   : > { %p1775_p6 = scmp.lt.u32.totalorder %s1773_s17, %s1769_s26  ;;  %p1777_p11 = scmp.lt.u32.totalorder %s1769_s26, %s2168_s22 }
 0x4a0   : > { %p1771_p12 = pnand %p1770_p9, %p2257_p3 }
 0x4a1   : > { %p1776_p10 = por %p1775_p6, %p1774_p1 }
 0x4a2   : > { %p1772_p13 = pneg %p1771_p12 }
 0x4a3   : > { %p1778_p4 = por %p1777_p11, %p1776_p10 }
 0x4a5   : > { %p1779_p8 = pnand %p1778_p4, %p1772_p13 }
 0x4a7   : > { %1782 = shalt.err (!%p1779_p8)
}
 0x4a8   : > { %s1852_s6 = smov 384   ;;  %s1853_s1 = smov 24  }
 0x4a9   : > { %1487 = dma.vmem_to_hbm [thread:$0]  (%p2257_p3), %s2163_s28, 768, %s2168_s22, %s1179_s0, %s1852_s6, %s1852_s6, %s1853_s1  }
 0x4aa PF: > { %s1207_s8 = sand.u32 1, %s1821_s18   ;;  %p2258_p7 = scmp.ne.s32.totalorder %s2235_s25, 0 }
 0x4ab   : > { %p2259_p0 = scmp.ge.s32.totalorder %s1833_s21, 2  ;;  %s1208_s12 = scalar_lea.sflag [#allocation5], %s1207_s8 }
 0x4ad   : > { %p1504_p2 = pnand %p2259_p0, %p2258_p7 }
 0x4af   : > { %1816 = dma.done.wait (!%p1504_p2), %s1208_s12, 768  }
 0x4b0   : > { %1818 = vsyncadd (!%p1504_p2), %s1208_s12, 4294966528  ;;  %s2260_s29 = sld [smem:[#allocation16_spill]]  ;;  %s2261_s20 = sld [smem:[#allocation17_spill]] }
 0x4b1   : > { %p19_p5 = scmp.ge.s32.totalorder %s1940_s30, 4   ;;  %s2262_s18 = smov %s1825_s19 }
 0x4b2   : > { %s2264_s21 = smov %s1940_s30 }
 0x4b3   :  { %21 = sbr.rel (!%p19_p5) target bundleno = 9 (0x9), region = 105 }
 0x4b6   : > { %s2263_s19 = smov %s2260_s29 }
 0x4ba   :  { %1213 = vsyncpa [#allocation4], 1 }
 0x4bb   :  { %1215 = vsyncpa [#allocation4 + $0x1], 1 }
 0x4bc   :  { %1216 = vsyncpa [#allocation7], 1 }
 0x4bd   :  { %1217 = vsyncpa [#allocation5], 1 }
 0x4be   :  { %1219 = vsyncpa [#allocation5 + $0x1], 1 }

</bundles_post_ra>
